<compile_context>
chip_gen: v5e
topology: v5e:2x2
jax: 0.10.0
libtpu: 0.0.40
codegen_flags: <defaults>
</compile_context>

<pallas_src>
import functools

import jax
import jax.numpy as jnp
from jax import lax
from jax.experimental import pallas as pl
from jax.experimental.pallas import tpu as pltpu

BN_EPS = 1e-5  # torch.nn.BatchNorm1d default eps


def _softplus(x):
    # Numerically stable softplus: max(x, 0) + log(1 + exp(-|x|)); exp/log go to EUP.
    return jnp.maximum(x, 0.0) + jnp.log(1.0 + jnp.exp(-jnp.abs(x)))


def _cdiv(a, b):
    return -(-a // b)


def _round_up(x, m):
    return ((x + m - 1) // m) * m


def _pad2(a, rows, cols):
    r, c = a.shape
    return jnp.pad(a, ((0, rows - r), (0, cols - c)))


def _device_plan():
    """Generation-aware tiling / VMEM-limit choices.

    v7x-class: 64 MiB VMEM, 2 TensorCores -> smaller tiles (>=2 grid steps), 48 MiB.
    v5e/v6e:  128 MiB VMEM, 1 TensorCore  -> big tiles, 96 MiB limit.
    """
    vmem_cap = 128 * 1024 * 1024
    try:
        vmem_cap = int(pltpu.get_tpu_info().vmem_capacity_bytes)
    except Exception:
        pass  # conservative fallback below
    if vmem_cap <= 64 * 1024 * 1024:
        return {"num_cores": 2, "max_tile": 512, "vmem_limit": 48 * 1024 * 1024}
    return {"num_cores": 1, "max_tile": 1024, "vmem_limit": 96 * 1024 * 1024}


def _plan_tiles(B, *, num_cores, max_tile):
    """Pad batch only to x8 and derive a tile size; waste <= a few rows per tile."""
    Bp8 = _round_up(max(B, 1), 8)
    n_tiles = _cdiv(Bp8, max_tile)
    if num_cores > 1 and Bp8 >= 8 * num_cores:
        n_tiles = max(n_tiles, num_cores)   # give every TensorCore a grid step
    tb = _round_up(_cdiv(Bp8, n_tiles), 8)
    n_tiles = _cdiv(Bp8, tb)
    Bp = n_tiles * tb
    return tb, n_tiles, Bp


def _make_mlp_kernel(n_hidden, widths, head_width, tile_b, batch_real):
    """Fused per-tile MLP: softplus stack + fused (mu|sigma) head + masked BN partials."""
    n_w = n_hidden + 2  # input Linear + hidden Linears + fused head

    def kernel(*refs):
        x_ref = refs[0]
        w_refs = refs[1:1 + n_w]
        bias_ref = refs[1 + n_w]
        heads_ref = refs[2 + n_w]
        stats_ref = refs[3 + n_w]

        h = x_ref[...].astype(jnp.float32)                          # (TB, E)
        for li in range(n_hidden + 1):
            b = bias_ref[li:li + 1, :widths[li]]                     # (1, W_li)
            h = _softplus(
                jnp.dot(h, w_refs[li][...], preferred_element_type=jnp.float32) + b)

        # TODO(synk): nn.Dropout(p=0.2) treated as eval-mode identity (deterministic).
        bh = bias_ref[n_hidden + 1:n_hidden + 2, :head_width]        # (1, Wh)
        heads = jnp.dot(h, w_refs[n_hidden + 1][...],
                        preferred_element_type=jnp.float32) + bh     # (TB, Wh)
        heads_ref[...] = heads

        # Per-tile BatchNorm partials (sum / sum-of-squares), padded rows masked out.
        row = (pl.program_id(0) * tile_b
               + lax.broadcasted_iota(jnp.int32, (tile_b, 1), 0))
        valid = (row < batch_real).astype(jnp.float32)               # (TB, 1)
        hv = heads * valid
        stats_ref[...] = jnp.concatenate(
            [jnp.sum(hv, axis=0, keepdims=True),
             jnp.sum(hv * heads, axis=0, keepdims=True),
             jnp.zeros((6, head_width), jnp.float32)], axis=0)       # (8, Wh)

    return kernel


def _bn_apply_kernel(h_ref, p_ref, out_ref):
    """Apply precomputed BatchNorm: out = h * rstd + (-mean * rstd)."""
    out_ref[...] = (h_ref[...] * p_ref[0:1, :] + p_ref[1:2, :]).astype(out_ref.dtype)


@functools.partial(jax.jit, static_argnames=("out_dtype",))
def encoder_forward(x, w_in, b_in, hidden_ws, hidden_bs, w_mu, b_mu, w_sig, b_sig,
                    *, out_dtype=jnp.float32):
    """x: (B, E). Returns (mu, log_sigma), each (B, n_topics)."""
    B, E = x.shape
    K = w_mu.shape[1]
    n_hidden = len(hidden_ws)

    plan = _device_plan()
    tb, n_tiles, Bp = _plan_tiles(B, num_cores=plan["num_cores"],
                                  max_tile=plan["max_tile"])

    # Lane-dense padded layer widths (zero padding keeps the math exact).
    hid_sizes = [w_in.shape[1]] + [w.shape[1] for w in hidden_ws]
    widths = tuple(_round_up(h, 128) for h in hid_sizes)
    head_width = _round_up(2 * K, 128)

    # Padded weights: input Linear, hidden Linears, fused (mu|sigma) head.
    w_list = [_pad2(w_in.astype(jnp.float32), E, widths[0])]
    for i, w in enumerate(hidden_ws):
        w_list.append(_pad2(w.astype(jnp.float32), widths[i], widths[i + 1]))
    w_head = jnp.concatenate([w_mu, w_sig], axis=1).astype(jnp.float32)  # (H_last, 2K)
    w_list.append(_pad2(w_head, widths[-1], head_width))

    # All biases packed into one small lane-dense array -> single DMA.
    W_max = max(max(widths), head_width)
    n_layers = n_hidden + 2
    b_rows = _round_up(n_layers, 8)
    b_all = [b_in] + list(hidden_bs) + [jnp.concatenate([b_mu, b_sig])]
    bias_pack = jnp.zeros((b_rows, W_max), jnp.float32)
    for i, b in enumerate(b_all):
        bias_pack = bias_pack.at[i, :b.shape[0]].set(b.astype(jnp.float32))

    if Bp != B:
        x = jnp.pad(x, ((0, Bp - B), (0, 0)))

    def const_spec(a):  # full-array block, resident across the whole grid
        return pl.BlockSpec(a.shape, lambda i: (0, 0))

    in_specs = [pl.BlockSpec((tb, E), lambda i: (i, 0))]
    in_specs += [const_spec(w) for w in w_list]
    in_specs += [const_spec(bias_pack)]

    heads, stats = pl.pallas_call(
        _make_mlp_kernel(n_hidden, widths, head_width, tb, B),
        out_shape=(jax.ShapeDtypeStruct((Bp, head_width), jnp.float32),
                   jax.ShapeDtypeStruct((n_tiles * 8, head_width), jnp.float32)),
        grid_spec=pltpu.PrefetchScalarGridSpec(
            num_scalar_prefetch=0,
            grid=(n_tiles,),
            in_specs=in_specs,
            out_specs=(pl.BlockSpec((tb, head_width), lambda i: (i, 0)),
                       pl.BlockSpec((8, head_width), lambda i: (i, 0))),
        ),
        compiler_params=pltpu.CompilerParams(
            dimension_semantics=("parallel",),       # shards across TCs on v7x
            vmem_limit_bytes=plan["vmem_limit"],
        ),
    )(x, *w_list, bias_pack)

    # Tiny cross-tile reduction of BN statistics in plain XLA (few KB of data).
    # TODO(synk): training-mode batch statistics; running_mean/var are not modeled.
    stats = stats.reshape(n_tiles, 8, head_width)
    col_sum = jnp.sum(stats[:, 0, :], axis=0)
    col_sq = jnp.sum(stats[:, 1, :], axis=0)
    mean = col_sum / B
    var = jnp.maximum(col_sq / B - mean * mean, 0.0)   # biased var (BN semantics)
    rstd = lax.rsqrt(var + BN_EPS)
    bn_params = jnp.zeros((8, head_width), jnp.float32)
    bn_params = bn_params.at[0].set(rstd).at[1].set(-mean * rstd)

    # Tiled, pipelined BatchNorm-apply (scales with B; no grid=(1,) full-batch block).
    normed = pl.pallas_call(
        _bn_apply_kernel,
        out_shape=jax.ShapeDtypeStruct((Bp, head_width), out_dtype),
        grid_spec=pltpu.PrefetchScalarGridSpec(
            num_scalar_prefetch=0,
            grid=(n_tiles,),
            in_specs=[pl.BlockSpec((tb, head_width), lambda i: (i, 0)),
                      pl.BlockSpec(bn_params.shape, lambda i: (0, 0))],
            out_specs=pl.BlockSpec((tb, head_width), lambda i: (i, 0)),
        ),
        compiler_params=pltpu.CompilerParams(
            dimension_semantics=("parallel",),
            vmem_limit_bytes=plan["vmem_limit"],
        ),
    )(heads, bn_params)

    mu = normed[:B, :K]
    log_sigma = normed[:B, K:2 * K]
    return mu, log_sigma


class EncoderParams:
    """Deterministic, in-script parameter construction matching Encoder.__init__."""

    def __init__(self, key, embedding_dim, n_topics, hidden_sizes=(100, 100)):
        self.embedding_dim = embedding_dim
        self.n_topics = n_topics
        self.hidden_sizes = tuple(hidden_sizes)

        def linear(k, fan_in, fan_out):
            # nn.Linear default init: U(-1/sqrt(fan_in), 1/sqrt(fan_in)) for W and b
            kw, kb = jax.random.split(k)
            bound = 1.0 / (fan_in ** 0.5)
            w = jax.random.uniform(kw, (fan_in, fan_out), jnp.float32, -bound, bound)
            b = jax.random.uniform(kb, (fan_out,), jnp.float32, -bound, bound)
            return w, b

        keys = jax.random.split(key, len(hidden_sizes) + 2)
        self.w_in, self.b_in = linear(keys[0], embedding_dim, hidden_sizes[0])
        self.hidden_ws, self.hidden_bs = [], []
        for i in range(len(hidden_sizes) - 1):
            w, b = linear(keys[1 + i], hidden_sizes[i], hidden_sizes[i + 1])
            self.hidden_ws.append(w)
            self.hidden_bs.append(b)
        self.w_mu, self.b_mu = linear(keys[-2], hidden_sizes[-1], n_topics)
        self.w_sig, self.b_sig = linear(keys[-1], hidden_sizes[-1], n_topics)

    def __call__(self, x):
        return encoder_forward(
            x, self.w_in, self.b_in,
            tuple(self.hidden_ws), tuple(self.hidden_bs),
            self.w_mu, self.b_mu, self.w_sig, self.b_sig)


def _reference(x, p):
    """Pure-JAX reference of the same forward (eval-mode dropout, batch-stat BN)."""
    hi = lax.Precision.HIGHEST

    h = _softplus(jnp.dot(x, p.w_in, precision=hi) + p.b_in)
    for w, b in zip(p.hidden_ws, p.hidden_bs):
        h = _softplus(jnp.dot(h, w, precision=hi) + b)

    def bn(v):
        m = jnp.mean(v, axis=0, keepdims=True)
        var = jnp.mean((v - m) ** 2, axis=0, keepdims=True)
        return (v - m) / jnp.sqrt(var + BN_EPS)

    mu = bn(jnp.dot(h, p.w_mu, precision=hi) + p.b_mu)
    log_sigma = bn(jnp.dot(h, p.w_sig, precision=hi) + p.b_sig)
    return mu, log_sigma


if __name__ == "__main__":
    key = jax.random.PRNGKey(0)
    kx, kx2, kp = jax.random.split(key, 3)

    embedding_dim = 32
    n_topics = 8
    hidden_sizes = (100, 100)
    batch = 8

    enc = EncoderParams(kp, embedding_dim, n_topics, hidden_sizes)
    x = jax.random.normal(kx, (batch, embedding_dim), jnp.float32)

    mu, log_sigma = enc(x)
    jax.block_until_ready((mu, log_sigma))

    ref_mu, ref_ls = _reference(x, enc)
    assert mu.shape == (batch, n_topics) and log_sigma.shape == (batch, n_topics)
    assert jnp.allclose(mu, ref_mu, atol=1e-4, rtol=1e-4)
    assert jnp.allclose(log_sigma, ref_ls, atol=1e-4, rtol=1e-4)
    # BN(affine=False) output columns have ~zero mean over the batch
    assert jnp.allclose(jnp.mean(mu, axis=0), 0.0, atol=1e-4)

    # Exercise the batch-padding / masked-statistics path (B not a multiple of 8).
    x2 = jax.random.normal(kx2, (10, embedding_dim), jnp.float32)
    mu2, ls2 = enc(x2)
    jax.block_until_ready((mu2, ls2))
    ref_mu2, ref_ls2 = _reference(x2, enc)
    assert mu2.shape == (10, n_topics) and ls2.shape == (10, n_topics)
    assert jnp.allclose(mu2, ref_mu2, atol=1e-4, rtol=1e-4)
    assert jnp.allclose(ls2, ref_ls2, atol=1e-4, rtol=1e-4)

    print("KERNEL_OK")
</pallas_src>

<mosaic_0001>
module attributes {stable_mosaic.version = 11 : i64} {
  func.func @kernel(%arg0: i32, %arg1: memref<8x32xf32, #tpu.memory_space<vmem>>, %arg2: memref<32x128xf32, #tpu.memory_space<vmem>>, %arg3: memref<128x128xf32, #tpu.memory_space<vmem>>, %arg4: memref<128x128xf32, #tpu.memory_space<vmem>>, %arg5: memref<8x128xf32, #tpu.memory_space<vmem>>, %arg6: memref<8x128xf32, #tpu.memory_space<vmem>>, %arg7: memref<8x128xf32, #tpu.memory_space<vmem>>) attributes {dimension_semantics = [#tpu.dimension_semantics<parallel>], iteration_bounds = array<i64: 1>, scalar_prefetch = 0 : i64, scratch_operands = 0 : i64, tpu.core_type = #tpu.core_type<tc>, window_params = [{transform_indices = @transform_0, window_bounds = array<i64: 8, 32>}, {pipeline_mode = #tpu.pipeline_mode<synchronous>, transform_indices = @transform_1, window_bounds = array<i64: 32, 128>}, {pipeline_mode = #tpu.pipeline_mode<synchronous>, transform_indices = @transform_2, window_bounds = array<i64: 128, 128>}, {pipeline_mode = #tpu.pipeline_mode<synchronous>, transform_indices = @transform_3, window_bounds = array<i64: 128, 128>}, {pipeline_mode = #tpu.pipeline_mode<synchronous>, transform_indices = @transform_4, window_bounds = array<i64: 8, 128>}, {transform_indices = @transform_5, window_bounds = array<i64: 8, 128>}, {transform_indices = @transform_6, window_bounds = array<i64: 8, 128>}]} {
    %c0 = arith.constant 0 : index
    %c0_0 = arith.constant 0 : index
    %0 = vector.load %arg1[%c0, %c0_0] : memref<8x32xf32, #tpu.memory_space<vmem>>, vector<8x32xf32>
    %c0_1 = arith.constant 0 : index
    %c0_2 = arith.constant 0 : index
    %1 = vector.load %arg5[%c0_1, %c0_2] : memref<8x128xf32, #tpu.memory_space<vmem>>, vector<1x128xf32>
    %c0_3 = arith.constant 0 : index
    %c0_4 = arith.constant 0 : index
    %2 = vector.load %arg2[%c0_3, %c0_4] : memref<32x128xf32, #tpu.memory_space<vmem>>, vector<32x128xf32>
    %cst = arith.constant dense<0.000000e+00> : vector<8x128xf32>
    %3 = tpu.matmul %0, %2, %cst {dimension_numbers = #tpu.dot_dimension_numbers<[1], [0], [0], [1], [0, 0, 1, 1], [], []>} : vector<8x32xf32>, vector<32x128xf32>, vector<8x128xf32> -> vector<8x128xf32>
    %4 = vector.broadcast %1 : vector<1x128xf32> to vector<8x128xf32>
    %5 = arith.addf %3, %4 : vector<8x128xf32>
    %cst_5 = arith.constant 0.000000e+00 : f32
    %6 = vector.broadcast %cst_5 : f32 to vector<8x128xf32>
    %7 = arith.maximumf %5, %6 : vector<8x128xf32>
    %8 = math.absf %5 : vector<8x128xf32>
    %cst_6 = arith.constant 0.000000e+00 : f32
    %9 = vector.broadcast %cst_6 : f32 to vector<8x128xf32>
    %10 = arith.subf %9, %8 : vector<8x128xf32>
    %11 = math.exp %10 : vector<8x128xf32>
    %cst_7 = arith.constant 1.000000e+00 : f32
    %12 = vector.broadcast %cst_7 : f32 to vector<8x128xf32>
    %13 = arith.addf %12, %11 : vector<8x128xf32>
    %14 = math.log %13 : vector<8x128xf32>
    %15 = arith.addf %7, %14 : vector<8x128xf32>
    %c1 = arith.constant 1 : index
    %c0_8 = arith.constant 0 : index
    %16 = vector.load %arg5[%c1, %c0_8] : memref<8x128xf32, #tpu.memory_space<vmem>>, vector<1x128xf32>
    %c0_9 = arith.constant 0 : index
    %c0_10 = arith.constant 0 : index
    %17 = vector.load %arg3[%c0_9, %c0_10] : memref<128x128xf32, #tpu.memory_space<vmem>>, vector<128x128xf32>
    %cst_11 = arith.constant dense<0.000000e+00> : vector<8x128xf32>
    %18 = tpu.matmul %15, %17, %cst_11 {dimension_numbers = #tpu.dot_dimension_numbers<[1], [0], [0], [1], [0, 0, 1, 1], [], []>} : vector<8x128xf32>, vector<128x128xf32>, vector<8x128xf32> -> vector<8x128xf32>
    %19 = vector.broadcast %16 : vector<1x128xf32> to vector<8x128xf32>
    %20 = arith.addf %18, %19 : vector<8x128xf32>
    %cst_12 = arith.constant 0.000000e+00 : f32
    %21 = vector.broadcast %cst_12 : f32 to vector<8x128xf32>
    %22 = arith.maximumf %20, %21 : vector<8x128xf32>
    %23 = math.absf %20 : vector<8x128xf32>
    %cst_13 = arith.constant 0.000000e+00 : f32
    %24 = vector.broadcast %cst_13 : f32 to vector<8x128xf32>
    %25 = arith.subf %24, %23 : vector<8x128xf32>
    %26 = math.exp %25 : vector<8x128xf32>
    %cst_14 = arith.constant 1.000000e+00 : f32
    %27 = vector.broadcast %cst_14 : f32 to vector<8x128xf32>
    %28 = arith.addf %27, %26 : vector<8x128xf32>
    %29 = math.log %28 : vector<8x128xf32>
    %30 = arith.addf %22, %29 : vector<8x128xf32>
    %c2 = arith.constant 2 : index
    %c0_15 = arith.constant 0 : index
    %31 = vector.load %arg5[%c2, %c0_15] : memref<8x128xf32, #tpu.memory_space<vmem>>, vector<1x128xf32>
    %c0_16 = arith.constant 0 : index
    %c0_17 = arith.constant 0 : index
    %32 = vector.load %arg4[%c0_16, %c0_17] : memref<128x128xf32, #tpu.memory_space<vmem>>, vector<128x128xf32>
    %cst_18 = arith.constant dense<0.000000e+00> : vector<8x128xf32>
    %33 = tpu.matmul %30, %32, %cst_18 {dimension_numbers = #tpu.dot_dimension_numbers<[1], [0], [0], [1], [0, 0, 1, 1], [], []>} : vector<8x128xf32>, vector<128x128xf32>, vector<8x128xf32> -> vector<8x128xf32>
    %34 = vector.broadcast %31 : vector<1x128xf32> to vector<8x128xf32>
    %35 = arith.addf %33, %34 : vector<8x128xf32>
    %c0_19 = arith.constant 0 : index
    %c0_20 = arith.constant 0 : index
    %36 = vector.load %arg6[%c0_19, %c0_20] : memref<8x128xf32, #tpu.memory_space<vmem>>, vector<8x128xf32>
    tpu.vector_store %arg6[%c0_19, %c0_20], %35 {strides = array<i32>} : memref<8x128xf32, #tpu.memory_space<vmem>>, vector<8x128xf32>,
    %c8_i32 = arith.constant 8 : i32
    %37 = arith.muli %arg0, %c8_i32 : i32
    %38 = tpu.iota {dimensions = array<i32: 0>} : vector<8x1xi32>
    %39 = vector.broadcast %37 : i32 to vector<8x1xi32>
    %40 = arith.addi %39, %38 : vector<8x1xi32>
    %c8_i32_21 = arith.constant 8 : i32
    %41 = vector.broadcast %c8_i32_21 : i32 to vector<8x1xi32>
    %42 = arith.cmpi slt, %40, %41 : vector<8x1xi32>
    %43 = arith.extui %42 : vector<8x1xi1> to vector<8x1xi32>
    %44 = arith.sitofp %43 : vector<8x1xi32> to vector<8x1xf32>
    %45 = vector.broadcast %44 : vector<8x1xf32> to vector<8x128xf32>
    %46 = arith.mulf %35, %45 : vector<8x128xf32>
    %cst_22 = arith.constant dense<0.000000e+00> : vector<128xf32>
    %47 = vector.multi_reduction <add>, %46, %cst_22 [0] : vector<8x128xf32> to vector<128xf32>
    %48 = vector.shape_cast %47 : vector<128xf32> to vector<1x128xf32>
    %49 = arith.mulf %46, %35 : vector<8x128xf32>
    %cst_23 = arith.constant dense<0.000000e+00> : vector<128xf32>
    %50 = vector.multi_reduction <add>, %49, %cst_23 [0] : vector<8x128xf32> to vector<128xf32>
    %51 = vector.shape_cast %50 : vector<128xf32> to vector<1x128xf32>
    %cst_24 = arith.constant 0.000000e+00 : f32
    %52 = vector.broadcast %cst_24 : f32 to vector<6x128xf32>
    %53 = tpu.concatenate %48, %51, %52 in 0 : vector<1x128xf32>, vector<1x128xf32>, vector<6x128xf32> -> vector<8x128xf32>
    %c0_25 = arith.constant 0 : index
    %c0_26 = arith.constant 0 : index
    %54 = vector.load %arg7[%c0_25, %c0_26] : memref<8x128xf32, #tpu.memory_space<vmem>>, vector<8x128xf32>
    tpu.vector_store %arg7[%c0_25, %c0_26], %53 {strides = array<i32>} : memref<8x128xf32, #tpu.memory_space<vmem>>, vector<8x128xf32>,
    return
  }
  func.func @transform_0(%arg0: i32) -> (i32, i32) {
    %c0_i32 = arith.constant 0 : i32
    %c0_i32_0 = arith.constant 0 : i32
    return %arg0, %c0_i32 : i32, i32
  }
  func.func @transform_1(%arg0: i32) -> (i32, i32) {
    %c0_i32 = arith.constant 0 : i32
    %c0_i32_0 = arith.constant 0 : i32
    %c0_i32_1 = arith.constant 0 : i32
    return %c0_i32, %c0_i32_0 : i32, i32
  }
  func.func @transform_2(%arg0: i32) -> (i32, i32) {
    %c0_i32 = arith.constant 0 : i32
    %c0_i32_0 = arith.constant 0 : i32
    %c0_i32_1 = arith.constant 0 : i32
    return %c0_i32, %c0_i32_0 : i32, i32
  }
  func.func @transform_3(%arg0: i32) -> (i32, i32) {
    %c0_i32 = arith.constant 0 : i32
    %c0_i32_0 = arith.constant 0 : i32
    %c0_i32_1 = arith.constant 0 : i32
    return %c0_i32, %c0_i32_0 : i32, i32
  }
  func.func @transform_4(%arg0: i32) -> (i32, i32) {
    %c0_i32 = arith.constant 0 : i32
    %c0_i32_0 = arith.constant 0 : i32
    %c0_i32_1 = arith.constant 0 : i32
    return %c0_i32, %c0_i32_0 : i32, i32
  }
  func.func @transform_5(%arg0: i32) -> (i32, i32) {
    %c0_i32 = arith.constant 0 : i32
    %c0_i32_0 = arith.constant 0 : i32
    return %arg0, %c0_i32 : i32, i32
  }
  func.func @transform_6(%arg0: i32) -> (i32, i32) {
    %c0_i32 = arith.constant 0 : i32
    %c0_i32_0 = arith.constant 0 : i32
    return %arg0, %c0_i32 : i32, i32
  }
}

module attributes {stable_mosaic.version = 11 : i64} {
  func.func @_bn_apply_kernel(%arg0: i32, %arg1: memref<8x128xf32, #tpu.memory_space<vmem>>, %arg2: memref<8x128xf32, #tpu.memory_space<vmem>>, %arg3: memref<8x128xf32, #tpu.memory_space<vmem>>) attributes {dimension_semantics = [#tpu.dimension_semantics<parallel>], iteration_bounds = array<i64: 1>, scalar_prefetch = 0 : i64, scratch_operands = 0 : i64, tpu.core_type = #tpu.core_type<tc>, window_params = [{transform_indices = @transform_0, window_bounds = array<i64: 8, 128>}, {pipeline_mode = #tpu.pipeline_mode<synchronous>, transform_indices = @transform_1, window_bounds = array<i64: 8, 128>}, {transform_indices = @transform_2, window_bounds = array<i64: 8, 128>}]} {
    %c0 = arith.constant 0 : index
    %c0_0 = arith.constant 0 : index
    %0 = vector.load %arg1[%c0, %c0_0] : memref<8x128xf32, #tpu.memory_space<vmem>>, vector<8x128xf32>
    %c0_1 = arith.constant 0 : index
    %c0_2 = arith.constant 0 : index
    %1 = vector.load %arg2[%c0_1, %c0_2] : memref<8x128xf32, #tpu.memory_space<vmem>>, vector<1x128xf32>
    %2 = vector.broadcast %1 : vector<1x128xf32> to vector<8x128xf32>
    %3 = arith.mulf %0, %2 : vector<8x128xf32>
    %c1 = arith.constant 1 : index
    %c0_3 = arith.constant 0 : index
    %4 = vector.load %arg2[%c1, %c0_3] : memref<8x128xf32, #tpu.memory_space<vmem>>, vector<1x128xf32>
    %5 = vector.broadcast %4 : vector<1x128xf32> to vector<8x128xf32>
    %6 = arith.addf %3, %5 : vector<8x128xf32>
    %c0_4 = arith.constant 0 : index
    %c0_5 = arith.constant 0 : index
    %7 = vector.load %arg3[%c0_4, %c0_5] : memref<8x128xf32, #tpu.memory_space<vmem>>, vector<8x128xf32>
    tpu.vector_store %arg3[%c0_4, %c0_5], %6 {strides = array<i32>} : memref<8x128xf32, #tpu.memory_space<vmem>>, vector<8x128xf32>,
    return
  }
  func.func @transform_0(%arg0: i32) -> (i32, i32) {
    %c0_i32 = arith.constant 0 : i32
    %c0_i32_0 = arith.constant 0 : i32
    return %arg0, %c0_i32 : i32, i32
  }
  func.func @transform_1(%arg0: i32) -> (i32, i32) {
    %c0_i32 = arith.constant 0 : i32
    %c0_i32_0 = arith.constant 0 : i32
    %c0_i32_1 = arith.constant 0 : i32
    return %c0_i32, %c0_i32_0 : i32, i32
  }
  func.func @transform_2(%arg0: i32) -> (i32, i32) {
    %c0_i32 = arith.constant 0 : i32
    %c0_i32_0 = arith.constant 0 : i32
    return %arg0, %c0_i32 : i32, i32
  }
}

</mosaic_0001>

<bundles_post_ra>
// kernel: encoder_forward.3
= control target key start
LH: loop header
LB: loop body
LE: loop exit
PB: predicated region body
PF: predicated region fallthrough
CT: control target
= control target key end

     0   :  { %s52_s0 = inlined_call_operand.vmem [shape: f32[8,128], index: 0, kind: input, shape index: {}]   ;;  %s53_s1 = inlined_call_operand.vmem [shape: f32[8,128], index: 1, kind: input, shape index: {}]   ;;  %s54_s2 = inlined_call_operand.vmem [shape: f32[8,128], index: 2, kind: output, shape index: {}]  }
   0x1   :  { %v11_v0 = vld [vmem:[%s52_s0] sm:$0xff] }
   0x2   :  { %v23_v1 = vld [vmem:[%s53_s1] ss:$0 sm:$0xff]  ;;  %v24_v2 = vld [vmem:[%s53_s1 + $0x1] ss:$0 sm:$0xff] }
   0x3   :  { %v14_v3 = vmul.f32 %v23_v1, %v11_v0 }
   0x5   :  { %v17_v4 = vadd.f32 %v24_v2, %v14_v3 }
   0x7   :  { %18 = vst [vmem:[%s54_s2] sm:$0xff] %v17_v4 }

// kernel: encoder_forward.2
= control target key start
LH: loop header
LB: loop body
LE: loop exit
PB: predicated region body
PF: predicated region fallthrough
CT: control target
= control target key end

     0   :  { %vm29_vm0 = vcmask 261120   ;;  %vm170_vm1 = vcmask 1040384   ;;  %vm172_vm2 = vcmask 1041408   ;;  %s356_s1 = inlined_call_operand.vmem [shape: f32[32,128], index: 1, kind: input, shape index: {}]   ;;  %s357_s2 = inlined_call_operand.vmem [shape: f32[128,128], index: 2, kind: input, shape index: {}]   ;;  %s358_s4 = inlined_call_operand.vmem [shape: f32[8,128], index: 4, kind: input, shape index: {}]   ;;  %s359_s0 = inlined_call_operand.vmem [shape: f32[8,32], index: 0, kind: input, shape index: {}]   ;;  %s360_s3 = inlined_call_operand.vmem [shape: f32[128,128], index: 3, kind: input, shape index: {}]   ;;  %s361_s5 = inlined_call_operand.vmem [shape: f32[8,128], index: 5, kind: output, shape index: {0}]   ;;  %s362_s6 = inlined_call_operand.vmem [shape: f32[8,128], index: 6, kind: output, shape index: {1}]  }
   0x1   :  { %v27_v0 = vld [vmem:[%s356_s1 + $0x18] sm:$0xff]  ;;  %v26_v1 = vld [vmem:[%s356_s1 + $0x10] sm:$0xff]  ;;  %v25_v3 = vld [vmem:[%s356_s1 + $0x8] sm:$0xff] }
   0x2   :  { %45 = vmatpush.msra.mxu0 %v27_v0  ;;  %v78_v2 = vld [vmem:[%s357_s2 + $0x78] sm:$0xff]  ;;  %v24_v4 = vld [vmem:[%s356_s1] sm:$0xff]  ;;  %v77_v6 = vld [vmem:[%s357_s2 + $0x70] sm:$0xff] }
   0x3   :  { %80 = vmatpush.msra.mxu1 %v78_v2  ;;  %v22_v5 = vld [vmem:[%s359_s0] sm:$0xff]  ;;  %v76_v7 = vld [vmem:[%s357_s2 + $0x68] sm:$0xff]  ;;  %v74_v9 = vld [vmem:[%s357_s2 + $0x58] sm:$0xff] }
   0x4   :  { %46 = vmatpush.msra.mxu0 %v26_v1  ;;  %v75_v8 = vld [vmem:[%s357_s2 + $0x60] sm:$0xff]  ;;  %v73_v10 = vld [vmem:[%s357_s2 + $0x50] sm:$0xff]  ;;  %v72_v11 = vld [vmem:[%s357_s2 + $0x48] sm:$0xff] }
   0x5   :  { %81 = vmatpush.msra.mxu1 %v77_v6  ;;  %v71_v12 = vld [vmem:[%s357_s2 + $0x40] sm:$0xff]  ;;  %v70_v13 = vld [vmem:[%s357_s2 + $0x38] sm:$0xff]  ;;  %v69_v14 = vld [vmem:[%s357_s2 + $0x30] sm:$0xff] }
   0x6   :  { %47 = vmatpush.msra.mxu0 %v25_v3  ;;  %v68_v15 = vld [vmem:[%s357_s2 + $0x28] sm:$0xff]  ;;  %v67_v16 = vld [vmem:[%s357_s2 + $0x20] sm:$0xff]  ;;  %v66_v17 = vld [vmem:[%s357_s2 + $0x18] sm:$0xff] }
   0x7   :  { %82 = vmatpush.msra.mxu1 %v76_v7  ;;  %v65_v18 = vld [vmem:[%s357_s2 + $0x10] sm:$0xff]  ;;  %v64_v19 = vld [vmem:[%s357_s2 + $0x8] sm:$0xff]  ;;  %v63_v20 = vld [vmem:[%s357_s2] sm:$0xff] }
   0x8   :  { %48 = vmatpush.msra.mxu0 %v24_v4  ;;  %v184_v21 = vld [vmem:[%s358_s4] ss:$0 sm:$0xff]  ;;  %v125_v22 = vld [vmem:[%s360_s3 + $0x78] sm:$0xff]  ;;  %v124_v34 = vld [vmem:[%s360_s3 + $0x70] sm:$0xff] }
   0x9   :  { %183 = vmatmul.msk.f32.vlgmr.msra.gmra.mxu0 %vm29_vm0, %v22_v5  ;;  %83 = vmatpush.msra.mxu1 %v75_v8  ;;  %v123_v35 = vld [vmem:[%s360_s3 + $0x68] sm:$0xff]  ;;  %v122_v36 = vld [vmem:[%s360_s3 + $0x60] sm:$0xff]  ;;  %v121_v37 = vld [vmem:[%s360_s3 + $0x58] sm:$0xff] }
   0xa   :  { %127 = vmatpush.msra.mxu2 %v125_v22  ;;  %v120_v38 = vld [vmem:[%s360_s3 + $0x50] sm:$0xff]  ;;  %v119_v39 = vld [vmem:[%s360_s3 + $0x48] sm:$0xff]  ;;  %v118_v40 = vld [vmem:[%s360_s3 + $0x40] sm:$0xff] }
   0xb   :  { %84 = vmatpush.msra.mxu1 %v74_v9  ;;  %v117_v41 = vld [vmem:[%s360_s3 + $0x38] sm:$0xff]  ;;  %v116_v42 = vld [vmem:[%s360_s3 + $0x30] sm:$0xff]  ;;  %v115_v43 = vld [vmem:[%s360_s3 + $0x28] sm:$0xff] }
   0xc   :  { %128 = vmatpush.msra.mxu2 %v124_v34  ;;  %v114_v44 = vld [vmem:[%s360_s3 + $0x20] sm:$0xff]  ;;  %v113_v45 = vld [vmem:[%s360_s3 + $0x18] sm:$0xff]  ;;  %v112_v46 = vld [vmem:[%s360_s3 + $0x10] sm:$0xff] }
   0xd   :  { %85 = vmatpush.msra.mxu1 %v73_v10  ;;  %v111_v47 = vld [vmem:[%s360_s3 + $0x8] sm:$0xff]  ;;  %v110_v48 = vld [vmem:[%s360_s3] sm:$0xff] }
   0xe   :  { %129 = vmatpush.msra.mxu2 %v123_v35  ;;  %v185_v49 = vld [vmem:[%s358_s4 + $0x1] ss:$0 sm:$0xff]  ;;  %v186_v61 = vld [vmem:[%s358_s4 + $0x2] ss:$0 sm:$0xff] }
   0xf   :  { %86 = vmatpush.msra.mxu1 %v72_v11 }
  0x10   :  { %130 = vmatpush.msra.mxu2 %v122_v36 }
  0x11   :  { %87 = vmatpush.msra.mxu1 %v71_v12 }
  0x12   :  { %131 = vmatpush.msra.mxu2 %v121_v37 }
  0x13   :  { %88 = vmatpush.msra.mxu1 %v70_v13 }
  0x14   :  { %132 = vmatpush.msra.mxu2 %v120_v38 }
  0x15   :  { %89 = vmatpush.msra.mxu1 %v69_v14 }
  0x16   :  { %133 = vmatpush.msra.mxu2 %v119_v39 }
  0x17   :  { %90 = vmatpush.msra.mxu1 %v68_v15 }
  0x18   :  { %134 = vmatpush.msra.mxu2 %v118_v40 }
  0x19   :  { %91 = vmatpush.msra.mxu1 %v67_v16 }
  0x1a   :  { %135 = vmatpush.msra.mxu2 %v117_v41 }
  0x1b   :  { %92 = vmatpush.msra.mxu1 %v66_v17 }
  0x1c   :  { %136 = vmatpush.msra.mxu2 %v116_v42 }
  0x1d   :  { %93 = vmatpush.msra.mxu1 %v65_v18 }
  0x1e   :  { %137 = vmatpush.msra.mxu2 %v115_v43 }
  0x1f   :  { %94 = vmatpush.msra.mxu1 %v64_v19 }
  0x20   :  { %138 = vmatpush.msra.mxu2 %v114_v44 }
  0x21   :  { %95 = vmatpush.msra.mxu1 %v63_v20 }
  0x22   :  { %139 = vmatpush.msra.mxu2 %v113_v45 }
  0x24   :  { %140 = vmatpush.msra.mxu2 %v112_v46 }
  0x26   :  { %141 = vmatpush.msra.mxu2 %v111_v47 }
  0x28   :  { %142 = vmatpush.msra.mxu2 %v110_v48 }
  0x86   :  { %v50_v23 = vpop.f32.mrf.mxu0 }
  0x87   :  { %v51_v24 = vadd.f32 %v184_v21, %v50_v23 }
  0x89   :  { %v54_v25 = vand.u32 2147483647, %v51_v24  ;;  %v53_v31 = vmax.f32 %v51_v24, 0.0 }
  0x8b   :  { %v55_v26 = vsub.f32 0.0, %v54_v25 }
  0x8d   :  { %v56_v27 = vmul.f32 1.442695, %v55_v26 }
  0x8f   :  { %187 = vpow2.f32 %v56_v27 }
  0x95   :  { %v188_v28 = vpop.eup %187 }
  0x96   :  { %v58_v29 = vadd.f32 1.0, %v188_v28 }
  0x98   :  { %189 = vlog2.f32 %v58_v29 }
  0x9e   :  { %v190_v30 = vpop.eup %189 }
  0x9f   :  { %v60_v32 = vmul.f32 0.6931472, %v190_v30 }
  0xa1   :  { %v61_v33 = vadd.f32 %v60_v32, %v53_v31 }
  0xa3   :  { %96 = vmatmul.f32.vlgmr.msra.gmra.mxu1 %v61_v33 }
 0x120   :  { %v97_v50 = vpop.f32.mrf.mxu1 }
 0x121   :  { %v98_v51 = vadd.f32 %v185_v49, %v97_v50 }
 0x123   :  { %v101_v52 = vand.u32 2147483647, %v98_v51  ;;  %v100_v58 = vmax.f32 %v98_v51, 0.0 }
 0x125   :  { %v102_v53 = vsub.f32 0.0, %v101_v52 }
 0x127   :  { %v103_v54 = vmul.f32 1.442695, %v102_v53 }
 0x129   :  { %191 = vpow2.f32 %v103_v54 }
 0x12f   :  { %v192_v55 = vpop.eup %191 }
 0x130   :  { %v105_v56 = vadd.f32 1.0, %v192_v55 }
 0x132   :  { %193 = vlog2.f32 %v105_v56 }
 0x138   :  { %v194_v57 = vpop.eup %193 }
 0x139   :  { %v107_v59 = vmul.f32 0.6931472, %v194_v57 }
 0x13b   :  { %v108_v60 = vadd.f32 %v107_v59, %v100_v58 }
 0x13d   :  { %143 = vmatmul.f32.vlgmr.msra.gmra.mxu2 %v108_v60 }
 0x1c0   :  { %v144_v62 = vpop.f32.mrf.mxu2 }
 0x1c1   :  { %v145_v63 = vadd.f32 %v186_v61, %v144_v62 }
 0x1c3   :  { %147 = vst [vmem:[%s361_s5] sm:$0xff] %v145_v63  ;;  %v157_v0 = vrot.slane %v145_v63, 4  ;;  %v163_v1 = vmul.f32 %v145_v63, %v145_v63 }
 0x1c5   :  { %v158_v2 = vadd.f32 %v157_v0, %v145_v63  ;;  %v164_v3 = vrot.slane %v163_v1, 4 }
 0x1c7   :  { %v159_v4 = vrot.slane %v158_v2, 2  ;;  %v165_v5 = vadd.f32 %v164_v3, %v163_v1 }
 0x1c9   :  { %v160_v6 = vadd.f32 %v159_v4, %v158_v2  ;;  %v166_v7 = vrot.slane %v165_v5, 2 }
 0x1cb   :  { %v161_v8 = vrot.slane %v160_v6, 1  ;;  %v167_v9 = vadd.f32 %v166_v7, %v165_v5 }
 0x1cd   :  { %v168_v10 = vrot.slane %v167_v9, 1  ;;  %v162_v11 = vadd.f32 %v161_v8, %v160_v6 }
 0x1cf   :  { %v169_v12 = vadd.f32 %v168_v10, %v167_v9 }
 0x1d1   :  { %v171_v13 = vsel %vm170_vm1, %v162_v11, %v169_v12 }
 0x1d2   :  { %v173_v14 = vsel %vm172_vm2, %v171_v13, 0.0 }
 0x1d3   :  { %174 = vst [vmem:[%s362_s6] sm:$0xff] %v173_v14 }

</bundles_post_ra>
